<compile_context>
chip_gen: v7x
topology: tpu7x:2x2x1
jax: 0.10.0
libtpu: 0.0.40
codegen_flags: <defaults>
</compile_context>

<pallas_src>
import functools

import jax
import jax.numpy as jnp
from jax.experimental import pallas as pl
from jax.experimental.pallas import tpu as pltpu


def _round_up(x, m):
    return (x + m - 1) // m * m


def _vae_encoder_kernel(num_layers, leaky_slope, latent, *refs):
    """One batch tile of the fused VAE-encoder forward pass.

    refs = (x, w0, b0, ..., w_{L-1}, b_{L-1}, w_heads, b_heads, eps,
            z_out, kl_rows_out)
    Weights arrive transposed to (in, out) in bf16; biases as (1, out) f32.
    w_heads packs [W_mu | W_sigma] tightly along the output axis (width 2*latent).
    """
    idx = 0
    x_ref = refs[idx]; idx += 1
    layer_refs = []
    for _ in range(num_layers):
        layer_refs.append((refs[idx], refs[idx + 1]))
        idx += 2
    wh_ref, bh_ref = refs[idx], refs[idx + 1]; idx += 2
    eps_ref = refs[idx]; idx += 1
    z_ref = refs[idx]; idx += 1
    kl_ref = refs[idx]

    # AEBlock stack: Linear + LeakyReLU(negative_slope).
    # Matmuls in bf16 (f32 accumulation on the MXU); elementwise kept in f32.
    h = x_ref[...].astype(jnp.bfloat16)
    for w_ref, b_ref in layer_refs:
        y = jnp.dot(h, w_ref[...], preferred_element_type=jnp.float32) + b_ref[...]
        y = jnp.where(y >= 0.0, y, leaky_slope * y)
        h = y.astype(jnp.bfloat16)

    # Fused mu / sigma heads: one (TB, hidden) x (hidden, 2*latent) matmul, then slice.
    heads = jnp.dot(h, wh_ref[...], preferred_element_type=jnp.float32) + bh_ref[...]
    mu = heads[:, :latent]
    log_var = heads[:, latent:]

    # Reparameterization: z = eps * exp(0.5 * logvar) + mu.
    std = jnp.exp(0.5 * log_var)
    z_ref[...] = (eps_ref[...] * std + mu).astype(z_ref.dtype)

    # Per-row KL: -0.5 * sum_d(1 + logvar - mu^2 - exp(logvar)), exp(logvar) == std*std.
    var = std * std
    kl_ref[...] = -0.5 * jnp.sum(1.0 + log_var - mu * mu - var,
                                 axis=1, keepdims=True)


def prepare_params(params):
    """One-time conversion of PyTorch-style params to kernel-ready layout.

    params["layers"] = [(W_i (out,in), b_i (out,)), ...]
    params["mu"]     = (W_mu (latent,hid), b_mu (latent,))
    params["sigma"]  = (W_sig (latent,hid), b_sig (latent,))
    """
    layers = []
    for W, b in params["layers"]:
        layers.append((jnp.asarray(W, jnp.float32).T.astype(jnp.bfloat16),
                       jnp.asarray(b, jnp.float32).reshape(1, -1)))

    W_mu, b_mu = params["mu"]
    W_sig, b_sig = params["sigma"]
    latent = W_mu.shape[0]

    # Tightly packed fused head: [W_mu | W_sigma] -> (hidden, 2*latent).
    head_w = jnp.concatenate(
        [jnp.asarray(W_mu, jnp.float32).T, jnp.asarray(W_sig, jnp.float32).T],
        axis=1).astype(jnp.bfloat16)
    head_b = jnp.concatenate(
        [jnp.asarray(b_mu, jnp.float32), jnp.asarray(b_sig, jnp.float32)]
    ).reshape(1, -1)

    return {"layers": layers, "head_w": head_w, "head_b": head_b, "latent": latent}


def variational_encoder_forward(x, prepped, eps, leaky_relu_slope=0.2, block_b=None):
    """Returns (z, kl) matching the PyTorch module's forward output and `self.kl`."""
    batch, in_ch = x.shape
    latent = prepped["latent"]

    # Batch tile: >= 256 rows when the batch allows it, else one tile rounded to 8.
    if block_b is None:
        block_b = 256 if batch >= 256 else _round_up(batch, 8)
    block_b = max(8, _round_up(block_b, 8))
    b_pad = _round_up(batch, block_b)
    grid = (b_pad // block_b,)

    if b_pad != batch:
        x_p = jnp.pad(x, ((0, b_pad - batch), (0, 0)))
        eps_p = jnp.pad(eps, ((0, b_pad - batch), (0, 0)))
    else:
        x_p, eps_p = x, eps

    inputs = [x_p]
    in_specs = [pl.BlockSpec((block_b, in_ch), lambda i: (i, 0))]
    for W, b in prepped["layers"]:
        inputs += [W, b]
        in_specs += [pl.BlockSpec(W.shape, lambda i: (0, 0)),   # resident across grid
                     pl.BlockSpec(b.shape, lambda i: (0, 0))]
    inputs += [prepped["head_w"], prepped["head_b"], eps_p]
    in_specs += [pl.BlockSpec(prepped["head_w"].shape, lambda i: (0, 0)),
                 pl.BlockSpec(prepped["head_b"].shape, lambda i: (0, 0)),
                 pl.BlockSpec((block_b, latent), lambda i: (i, 0))]

    kernel = functools.partial(
        _vae_encoder_kernel, len(prepped["layers"]), float(leaky_relu_slope), latent
    )

    z_pad, kl_rows = pl.pallas_call(
        kernel,
        grid=grid,
        in_specs=in_specs,
        out_specs=(
            pl.BlockSpec((block_b, latent), lambda i: (i, 0)),  # z, true latent width
            pl.BlockSpec((block_b, 1), lambda i: (i, 0)),       # per-row KL partials
        ),
        out_shape=(
            jax.ShapeDtypeStruct((b_pad, latent), jnp.float32),
            jax.ShapeDtypeStruct((b_pad, 1), jnp.float32),
        ),
        compiler_params=pltpu.CompilerParams(
            dimension_semantics=("parallel",)),
    )(*inputs)

    z = z_pad if b_pad == batch else z_pad[:batch]
    kl = jnp.sum(kl_rows[:batch, 0]) / batch   # mean over batch of per-sample KL
    return z, kl


def _init_linear(key, in_features, out_features):
    """Deterministic PyTorch-like init: U(-1/sqrt(fan_in), 1/sqrt(fan_in))."""
    kw, kb = jax.random.split(key)
    bound = 1.0 / jnp.sqrt(jnp.float32(in_features))
    W = jax.random.uniform(
        kw, (out_features, in_features), jnp.float32, minval=-bound, maxval=bound
    )
    b = jax.random.uniform(
        kb, (out_features,), jnp.float32, minval=-bound, maxval=bound
    )
    return W, b


def init_variational_encoder(key, in_channel, out_channels, latent_dims):
    keys = jax.random.split(key, len(out_channels) + 2)
    layers = []
    prev = in_channel
    for i, oc in enumerate(out_channels):
        layers.append(_init_linear(keys[i], prev, oc))
        prev = oc
    mu = _init_linear(keys[len(out_channels)], prev, latent_dims)
    sigma = _init_linear(keys[len(out_channels) + 1], prev, latent_dims)
    return {"layers": layers, "mu": mu, "sigma": sigma}


def _reference_forward(x, params, eps, slope):
    """Pure-JAX f32 reference matching the PyTorch module."""
    h = x
    for W, b in params["layers"]:
        h = h @ W.T + b
        h = jnp.where(h >= 0.0, h, slope * h)
    W_mu, b_mu = params["mu"]
    W_sig, b_sig = params["sigma"]
    mu = h @ W_mu.T + b_mu
    log_var = h @ W_sig.T + b_sig
    std = jnp.exp(0.5 * log_var)
    z = eps * std + mu
    kl = jnp.mean(-0.5 * jnp.sum(1.0 + log_var - mu ** 2 - jnp.exp(log_var), axis=1))
    return z, kl


if __name__ == "__main__":
    # Small shapes consistent with the module's MLP forward: x is (batch, in_channel).
    # batch=100 with block_b=32 exercises a multi-step grid (4 tiles) plus batch padding.
    batch = 100
    in_channel = 32
    out_channels = [64, 32]
    latent_dims = 16

    root = jax.random.PRNGKey(0)
    k_params, k_x, k_eps = jax.random.split(root, 3)

    params = init_variational_encoder(k_params, in_channel, out_channels, latent_dims)
    x = jax.random.normal(k_x, (batch, in_channel), jnp.float32)
    # eps ~ N(0, 1) corresponds to torch.randn_like(std) in reparameterize()
    eps = jax.random.normal(k_eps, (batch, latent_dims), jnp.float32)

    prepped = prepare_params(params)   # one-time weight transpose/fusion/bf16 cast
    z_ref, kl_ref = _reference_forward(x, params, eps, 0.2)

    # Multi-tile grid path (block_b=32 -> 4 grid steps + batch padding).
    z, kl = variational_encoder_forward(x, prepped, eps, leaky_relu_slope=0.2,
                                        block_b=32)
    jax.block_until_ready((z, kl))
    assert z.shape == (batch, latent_dims)
    assert kl.shape == ()
    assert bool(jnp.all(jnp.isfinite(z))) and bool(jnp.isfinite(kl))
    assert bool(jnp.allclose(z, kl * 0 + z, rtol=0, atol=0))  # sanity: no NaN propagation
    assert bool(jnp.allclose(z, z_ref, rtol=5e-2, atol=5e-2)), "z mismatch vs reference"
    assert bool(jnp.allclose(kl, kl_ref, rtol=5e-2, atol=5e-2)), "kl mismatch vs reference"

    # Default single-tile path (block_b chosen automatically).
    z2, kl2 = variational_encoder_forward(x, prepped, eps, leaky_relu_slope=0.2)
    jax.block_until_ready((z2, kl2))
    assert bool(jnp.allclose(z2, z_ref, rtol=5e-2, atol=5e-2)), "z mismatch (default tile)"
    assert bool(jnp.allclose(kl2, kl_ref, rtol=5e-2, atol=5e-2)), "kl mismatch (default tile)"

    print("KERNEL_OK")
</pallas_src>

<mosaic_0001>
module attributes {stable_mosaic.version = 11 : i64} {
  func.func @_vae_encoder_kernel(%arg0: i32, %arg1: memref<32x32xf32, #tpu.memory_space<vmem>>, %arg2: memref<32x64xbf16, #tpu.memory_space<vmem>>, %arg3: memref<1x64xf32, #tpu.memory_space<vmem>>, %arg4: memref<64x32xbf16, #tpu.memory_space<vmem>>, %arg5: memref<1x32xf32, #tpu.memory_space<vmem>>, %arg6: memref<32x32xbf16, #tpu.memory_space<vmem>>, %arg7: memref<1x32xf32, #tpu.memory_space<vmem>>, %arg8: memref<32x16xf32, #tpu.memory_space<vmem>>, %arg9: memref<32x16xf32, #tpu.memory_space<vmem>>, %arg10: memref<32x1xf32, #tpu.memory_space<vmem>>) attributes {dimension_semantics = [#tpu.dimension_semantics<parallel>], iteration_bounds = array<i64: 4>, scalar_prefetch = 0 : i64, scratch_operands = 0 : i64, tpu.core_type = #tpu.core_type<tc>, window_params = [{transform_indices = @transform_0, window_bounds = array<i64: 32, 32>}, {pipeline_mode = #tpu.pipeline_mode<synchronous>, transform_indices = @transform_1, window_bounds = array<i64: 32, 64>}, {pipeline_mode = #tpu.pipeline_mode<synchronous>, transform_indices = @transform_2, window_bounds = array<i64: 1, 64>}, {pipeline_mode = #tpu.pipeline_mode<synchronous>, transform_indices = @transform_3, window_bounds = array<i64: 64, 32>}, {pipeline_mode = #tpu.pipeline_mode<synchronous>, transform_indices = @transform_4, window_bounds = array<i64: 1, 32>}, {pipeline_mode = #tpu.pipeline_mode<synchronous>, transform_indices = @transform_5, window_bounds = array<i64: 32, 32>}, {pipeline_mode = #tpu.pipeline_mode<synchronous>, transform_indices = @transform_6, window_bounds = array<i64: 1, 32>}, {transform_indices = @transform_7, window_bounds = array<i64: 32, 16>}, {transform_indices = @transform_8, window_bounds = array<i64: 32, 16>}, {transform_indices = @transform_9, window_bounds = array<i64: 32, 1>}]} {
    %c0 = arith.constant 0 : index
    %c0_0 = arith.constant 0 : index
    %0 = vector.load %arg1[%c0, %c0_0] : memref<32x32xf32, #tpu.memory_space<vmem>>, vector<32x32xf32>
    %1 = arith.truncf %0 : vector<32x32xf32> to vector<32x32xbf16>
    %c0_1 = arith.constant 0 : index
    %c0_2 = arith.constant 0 : index
    %2 = vector.load %arg2[%c0_1, %c0_2] : memref<32x64xbf16, #tpu.memory_space<vmem>>, vector<32x64xbf16>
    %cst = arith.constant dense<0.000000e+00> : vector<32x64xf32>
    %3 = tpu.matmul %1, %2, %cst {dimension_numbers = #tpu.dot_dimension_numbers<[1], [0], [0], [1], [0, 0, 1, 1], [], []>} : vector<32x32xbf16>, vector<32x64xbf16>, vector<32x64xf32> -> vector<32x64xf32>
    %c0_3 = arith.constant 0 : index
    %c0_4 = arith.constant 0 : index
    %4 = vector.load %arg3[%c0_3, %c0_4] : memref<1x64xf32, #tpu.memory_space<vmem>>, vector<1x64xf32>
    %5 = vector.broadcast %4 : vector<1x64xf32> to vector<32x64xf32>
    %6 = arith.addf %3, %5 : vector<32x64xf32>
    %cst_5 = arith.constant 0.000000e+00 : f32
    %7 = vector.broadcast %cst_5 : f32 to vector<32x64xf32>
    %8 = arith.cmpf oge, %6, %7 : vector<32x64xf32>
    %cst_6 = arith.constant 2.000000e-01 : f32
    %9 = vector.broadcast %cst_6 : f32 to vector<32x64xf32>
    %10 = arith.mulf %9, %6 : vector<32x64xf32>
    %11 = arith.select %8, %6, %10 : vector<32x64xi1>, vector<32x64xf32>
    %12 = arith.truncf %11 : vector<32x64xf32> to vector<32x64xbf16>
    %c0_7 = arith.constant 0 : index
    %c0_8 = arith.constant 0 : index
    %13 = vector.load %arg4[%c0_7, %c0_8] : memref<64x32xbf16, #tpu.memory_space<vmem>>, vector<64x32xbf16>
    %cst_9 = arith.constant dense<0.000000e+00> : vector<32x32xf32>
    %14 = tpu.matmul %12, %13, %cst_9 {dimension_numbers = #tpu.dot_dimension_numbers<[1], [0], [0], [1], [0, 0, 1, 1], [], []>} : vector<32x64xbf16>, vector<64x32xbf16>, vector<32x32xf32> -> vector<32x32xf32>
    %c0_10 = arith.constant 0 : index
    %c0_11 = arith.constant 0 : index
    %15 = vector.load %arg5[%c0_10, %c0_11] : memref<1x32xf32, #tpu.memory_space<vmem>>, vector<1x32xf32>
    %16 = vector.broadcast %15 : vector<1x32xf32> to vector<32x32xf32>
    %17 = arith.addf %14, %16 : vector<32x32xf32>
    %cst_12 = arith.constant 0.000000e+00 : f32
    %18 = vector.broadcast %cst_12 : f32 to vector<32x32xf32>
    %19 = arith.cmpf oge, %17, %18 : vector<32x32xf32>
    %cst_13 = arith.constant 2.000000e-01 : f32
    %20 = vector.broadcast %cst_13 : f32 to vector<32x32xf32>
    %21 = arith.mulf %20, %17 : vector<32x32xf32>
    %22 = arith.select %19, %17, %21 : vector<32x32xi1>, vector<32x32xf32>
    %23 = arith.truncf %22 : vector<32x32xf32> to vector<32x32xbf16>
    %c0_14 = arith.constant 0 : index
    %c0_15 = arith.constant 0 : index
    %24 = vector.load %arg6[%c0_14, %c0_15] : memref<32x32xbf16, #tpu.memory_space<vmem>>, vector<32x32xbf16>
    %cst_16 = arith.constant dense<0.000000e+00> : vector<32x32xf32>
    %25 = tpu.matmul %23, %24, %cst_16 {dimension_numbers = #tpu.dot_dimension_numbers<[1], [0], [0], [1], [0, 0, 1, 1], [], []>} : vector<32x32xbf16>, vector<32x32xbf16>, vector<32x32xf32> -> vector<32x32xf32>
    %c0_17 = arith.constant 0 : index
    %c0_18 = arith.constant 0 : index
    %26 = vector.load %arg7[%c0_17, %c0_18] : memref<1x32xf32, #tpu.memory_space<vmem>>, vector<1x32xf32>
    %27 = vector.broadcast %26 : vector<1x32xf32> to vector<32x32xf32>
    %28 = arith.addf %25, %27 : vector<32x32xf32>
    %29 = vector.extract_strided_slice %28 {offsets = [0, 0], sizes = [32, 16], strides = [1, 1]} : vector<32x32xf32> to vector<32x16xf32>
    %30 = vector.extract_strided_slice %28 {offsets = [0, 16], sizes = [32, 16], strides = [1, 1]} : vector<32x32xf32> to vector<32x16xf32>
    %cst_19 = arith.constant 5.000000e-01 : f32
    %31 = vector.broadcast %cst_19 : f32 to vector<32x16xf32>
    %32 = arith.mulf %31, %30 : vector<32x16xf32>
    %33 = math.exp %32 : vector<32x16xf32>
    %c0_20 = arith.constant 0 : index
    %c0_21 = arith.constant 0 : index
    %34 = vector.load %arg8[%c0_20, %c0_21] : memref<32x16xf32, #tpu.memory_space<vmem>>, vector<32x16xf32>
    %35 = arith.mulf %34, %33 : vector<32x16xf32>
    %36 = arith.addf %35, %29 : vector<32x16xf32>
    %c0_22 = arith.constant 0 : index
    %c0_23 = arith.constant 0 : index
    %37 = vector.load %arg9[%c0_22, %c0_23] : memref<32x16xf32, #tpu.memory_space<vmem>>, vector<32x16xf32>
    tpu.vector_store %arg9[%c0_22, %c0_23], %36 {strides = array<i32>} : memref<32x16xf32, #tpu.memory_space<vmem>>, vector<32x16xf32>,
    %38 = arith.mulf %33, %33 : vector<32x16xf32>
    %cst_24 = arith.constant 1.000000e+00 : f32
    %39 = vector.broadcast %cst_24 : f32 to vector<32x16xf32>
    %40 = arith.addf %39, %30 : vector<32x16xf32>
    %41 = arith.mulf %29, %29 : vector<32x16xf32>
    %42 = arith.subf %40, %41 : vector<32x16xf32>
    %43 = arith.subf %42, %38 : vector<32x16xf32>
    %cst_25 = arith.constant dense<0.000000e+00> : vector<32xf32>
    %44 = vector.multi_reduction <add>, %43, %cst_25 [1] : vector<32x16xf32> to vector<32xf32>
    %45 = vector.shape_cast %44 : vector<32xf32> to vector<32x1xf32>
    %cst_26 = arith.constant -5.000000e-01 : f32
    %46 = vector.broadcast %cst_26 : f32 to vector<32x1xf32>
    %47 = arith.mulf %46, %45 : vector<32x1xf32>
    %c0_27 = arith.constant 0 : index
    %c0_28 = arith.constant 0 : index
    %48 = vector.load %arg10[%c0_27, %c0_28] : memref<32x1xf32, #tpu.memory_space<vmem>>, vector<32x1xf32>
    tpu.vector_store %arg10[%c0_27, %c0_28], %47 {strides = array<i32>} : memref<32x1xf32, #tpu.memory_space<vmem>>, vector<32x1xf32>,
    return
  }
  func.func @transform_0(%arg0: i32) -> (i32, i32) {
    %c0_i32 = arith.constant 0 : i32
    %c0_i32_0 = arith.constant 0 : i32
    return %arg0, %c0_i32 : i32, i32
  }
  func.func @transform_1(%arg0: i32) -> (i32, i32) {
    %c0_i32 = arith.constant 0 : i32
    %c0_i32_0 = arith.constant 0 : i32
    %c0_i32_1 = arith.constant 0 : i32
    return %c0_i32, %c0_i32_0 : i32, i32
  }
  func.func @transform_2(%arg0: i32) -> (i32, i32) {
    %c0_i32 = arith.constant 0 : i32
    %c0_i32_0 = arith.constant 0 : i32
    %c0_i32_1 = arith.constant 0 : i32
    return %c0_i32, %c0_i32_0 : i32, i32
  }
  func.func @transform_3(%arg0: i32) -> (i32, i32) {
    %c0_i32 = arith.constant 0 : i32
    %c0_i32_0 = arith.constant 0 : i32
    %c0_i32_1 = arith.constant 0 : i32
    return %c0_i32, %c0_i32_0 : i32, i32
  }
  func.func @transform_4(%arg0: i32) -> (i32, i32) {
    %c0_i32 = arith.constant 0 : i32
    %c0_i32_0 = arith.constant 0 : i32
    %c0_i32_1 = arith.constant 0 : i32
    return %c0_i32, %c0_i32_0 : i32, i32
  }
  func.func @transform_5(%arg0: i32) -> (i32, i32) {
    %c0_i32 = arith.constant 0 : i32
    %c0_i32_0 = arith.constant 0 : i32
    %c0_i32_1 = arith.constant 0 : i32
    return %c0_i32, %c0_i32_0 : i32, i32
  }
  func.func @transform_6(%arg0: i32) -> (i32, i32) {
    %c0_i32 = arith.constant 0 : i32
    %c0_i32_0 = arith.constant 0 : i32
    %c0_i32_1 = arith.constant 0 : i32
    return %c0_i32, %c0_i32_0 : i32, i32
  }
  func.func @transform_7(%arg0: i32) -> (i32, i32) {
    %c0_i32 = arith.constant 0 : i32
    %c0_i32_0 = arith.constant 0 : i32
    return %arg0, %c0_i32 : i32, i32
  }
  func.func @transform_8(%arg0: i32) -> (i32, i32) {
    %c0_i32 = arith.constant 0 : i32
    %c0_i32_0 = arith.constant 0 : i32
    return %arg0, %c0_i32 : i32, i32
  }
  func.func @transform_9(%arg0: i32) -> (i32, i32) {
    %c0_i32 = arith.constant 0 : i32
    %c0_i32_0 = arith.constant 0 : i32
    return %arg0, %c0_i32 : i32, i32
  }
}

</mosaic_0001>

<bundles_post_ra>
// kernel: tpu_custom_call.1
= control target key start
LH: loop header
LB: loop body
LE: loop exit
PB: predicated region body
PF: predicated region fallthrough
CT: control target
= control target key end

     0   :  { %s1039_s30 = smov 0   ;;  %s1165_s0 = inlined_call_operand.vmem [shape: f32[128,32], index: 0, kind: input, shape index: {}]   ;;  %s1166_s1 = inlined_call_operand.vmem [shape: bf16[32,64], index: 1, kind: input, shape index: {}]   ;;  %s1167_s2 = inlined_call_operand.vmem [shape: f32[1,64], index: 2, kind: input, shape index: {}]   ;;  %s1168_s3 = inlined_call_operand.vmem [shape: bf16[64,32], index: 3, kind: input, shape index: {}]   ;;  %s1169_s4 = inlined_call_operand.vmem [shape: f32[1,32], index: 4, kind: input, shape index: {}]   ;;  %s1170_s5 = inlined_call_operand.vmem [shape: bf16[32,32], index: 5, kind: input, shape index: {}]   ;;  %s1171_s6 = inlined_call_operand.vmem [shape: f32[1,32], index: 6, kind: input, shape index: {}]   ;;  %s1172_s7 = inlined_call_operand.vmem [shape: f32[128,16], index: 7, kind: input, shape index: {}]   ;;  %s1173_s8 = inlined_call_operand.vmem [shape: f32[128,16], index: 8, kind: output, shape index: {0}]   ;;  %s1174_s9 = inlined_call_operand.vmem [shape: f32[128,1], index: 9, kind: output, shape index: {1}]  }
   0x1 LB: > { %s879_s10 = sadd.s32 4294967295, %s985_s30   ;;  %p883_p0 = scmp.ge.s32.totalorder %s985_s30, 1  ;;  %s985_s30 = sphi %s1039_s30, %s20_s30  }
   0x2   : > { %p302_p1 = scmp.lt.s32.totalorder %s985_s30, 5 }
   0x4   : > { %p303_p2 = pnand %p883_p0, %p302_p1 }
   0x5   : > { %v963_v0 = vld [vmem:[%s1166_s1] sm:$0xff] (!%p303_p2)   ;;  %s884_s13 = sshll.u32 (!%p303_p2), %s879_s10, 2  ;;  %v964_v1 = vld [vmem:[%s1166_s1 + $0x8] sm:$0xff] (!%p303_p2)   ;;  %vm402_vm0 = vcmask (!%p303_p2), 261120   ;;  %v967_v10 = vld [vmem:[%s1168_s3 + $0x10] sm:$0xff] (!%p303_p2)   ;;  %vm511_vm5 = vcmask (!%p303_p2), 523264  }
   0x6   : > { %306 = sbr.rel (%p303_p2) target bundleno = 1081 (0x439), region = 52  ;;  %p349_p3 = scmp.lt.s32.totalorder (!%p303_p2), %s884_s13, 15  ;;  %925 = vmatprep.subr.bf16.mxu0 (!%p303_p2), %v963_v0  ;;  %v965_v2 = vld [vmem:[%s1168_s3] sm:$0xff] (!%p303_p2)   ;;  %v966_v9 = vld [vmem:[%s1168_s3 + $0x8] sm:$0xff] (!%p303_p2)   ;;  %v968_v11 = vld [vmem:[%s1168_s3 + $0x18] sm:$0xff] (!%p303_p2)   ;;  %vm699_vm10 = vcmask (!%p303_p2), 130048  }
   0x7   : > { %926 = vmatpush3.bf16.msra.mxu0 (!%p303_p2), %v963_v0  ;;  %933 = vmatprep.subr.bf16.mxu1 (!%p303_p2), %v965_v2  ;;  %v892_v12 = vld [vmem:[%s1167_s2] ss:$0 sm:$0xff] (!%p303_p2)  ;;  %v970_v32 = vld [vmem:[%s1170_s5 + $0x8] sm:$0xff] (!%p303_p2)   ;;  %s987_s19 = smov (!%p303_p2), 16   ;;  %s988_s20 = smov (!%p303_p2), 112   ;;  %vm772_vm11 = vcmask (!%p303_p2), 7168  }
   0x8   : > { %927 = vmatprep.subr.bf16.mxu0 (!%p303_p2), %v964_v1  ;;  %934 = vmatpush3.bf16.msra.mxu1 (!%p303_p2), %v965_v2  ;;  %v969_v31 = vld [vmem:[%s1170_s5] sm:$0xff] (!%p303_p2)  }
   0x9   : > { %935 = vmatprep.subr.bf16.mxu1 (!%p303_p2), %v966_v9  ;;  %v897_v33 = vld [vmem:[%s1169_s4] ss:$0 sm:$0xff] (!%p303_p2) }
   0xa   : > { %v904_v52 = vld [vmem:[%s1171_s6] ss:$0 sm:$0xff] (!%p303_p2) }
   0xb   : > { %928 = vmatpush3.bf16.msra.mxu0 (!%p303_p2), %v964_v1 }
   0xc   : > { %936 = vmatpush3.bf16.msra.mxu1 (!%p303_p2), %v966_v9  ;;  %945 = vmatprep.subr.bf16.mxu0 (!%p303_p2), %v969_v31 }
   0xd   : > { %s1176_s13 = smov (!%p349_p3, %s884_s13), 15  ;;  %937 = vmatprep.subr.bf16.mxu1 %v967_v10 }
   0xe   : > { %s1056_s18 = sshll.u32 %s1176_s13, 3 }
   0xf   : > { %s352_s21 = scalar_lea.vmem %s1165_s0, %s1056_s18  ;;  %s1126_s23 = scalar_lea.vmem %s1172_s7, %s1056_s18 }
  0x10   : > { %v373_v3 = vld [vmem:[%s352_s21] sm:$0xff]  ;;  %v374_v4 = vld [vmem:[%s352_s21 + $0x8] sm:$0xff]  ;;  %v375_v5 = vld [vmem:[%s352_s21 + $0x10] sm:$0xff]  ;;  %938 = vmatpush3.bf16.msra.mxu1 %v967_v10  ;;  %s1135_s26 = scalar_lea.vmem %s1173_s8, %s1056_s18  ;;  %s370_s29 = scalar_lea.vmem %s1174_s9, %s1056_s18 }
  0x11   : > { %v377_v6 = vpack.c.bf16 %v374_v4, %v373_v3  ;;  %v376_v7 = vld [vmem:[%s352_s21 + $0x18] sm:$0xff]  ;;  %939 = vmatprep.subr.bf16.mxu1 %v968_v11 }
  0x12   : > { %v378_v8 = vpack.c.bf16 %v376_v7, %v375_v5 }
  0x13   : > { %929 = vmatprep.mubr.msk.bf16.mxu0 %vm402_vm0, %v377_v6 }
  0x14   : > { %930 = vmatmul.mubr.msk.bf16.vlgmr.msra.gmra.mrb[0].mxu0 %vm402_vm0, %v378_v8  ;;  %940 = vmatpush3.bf16.msra.mxu1 %v968_v11 }
  0x15   : > { %946 = vmatpush3.bf16.msra.mxu0 %v969_v31 }
  0x16   : > { %947 = vmatprep.subr.bf16.mxu0 %v970_v32 }
  0x19   : > { %948 = vmatpush3.bf16.msra.mxu0 %v970_v32 }
  0xe7   : > { %v931_v13 = vpop.f32.mrb[0].mxu0 }
  0xe8   : > { %v452_v14 = vadd.f32 %v931_v13, %v892_v12  ;;  %v443_v15 = vpop.f32.mrb[1].mxu0 }
  0xe9   : > { %v444_v16 = vadd.f32 %v892_v12, %v443_v15  ;;  %v932_v17 = vpop.f32.mrb[2].mxu0 }
  0xea   : > { %v464_v18 = vmul.f32 0.2, %v452_v14  ;;  %v455_v19 = vadd.f32 %v932_v17, %v892_v12  ;;  %v446_v20 = vpop.f32.mrb[3].mxu0  ;;  %vm460_vm1 = vcmp.ge.f32.partialorder %v452_v14, 0.0 }
  0xeb   : > { %v462_v21 = vmul.f32 0.2, %v444_v16  ;;  %v447_v22 = vadd.f32 %v892_v12, %v446_v20  ;;  %vm458_vm3 = vcmp.ge.f32.partialorder %v444_v16, 0.0 }
  0xec   : > { %vm461_vm2 = vcmp.ge.f32.partialorder %v455_v19, 0.0  ;;  %v465_v23 = vmul.f32 0.2, %v455_v19  ;;  %v468_v25 = vsel %vm460_vm1, %v452_v14, %v464_v18 }
  0xed   : > { %v463_v24 = vmul.f32 0.2, %v447_v22  ;;  %vm459_vm4 = vcmp.ge.f32.partialorder %v447_v22, 0.0  ;;  %v466_v28 = vsel %vm458_vm3, %v444_v16, %v462_v21 }
  0xee   : > { %v469_v26 = vsel %vm461_vm2, %v455_v19, %v465_v23 }
  0xef   : > { %v471_v27 = vpack.c.bf16 %v469_v26, %v468_v25  ;;  %v467_v29 = vsel %vm459_vm4, %v447_v22, %v463_v24 }
  0xf0   : > { %v470_v30 = vpack.c.bf16 %v467_v29, %v466_v28 }
  0xf2   : > { %941 = vmatprep.mubr.msk.bf16.mxu1 %vm511_vm5, %v470_v30 }
  0xf3   : > { %942 = vmatmul.mubr.msk.bf16.vlgmr.msra.gmra.mrb[0].mxu1 %vm511_vm5, %v471_v27 }
 0x1c6   : > { %v943_v34 = vpop.f32.mrb[0].mxu1 }
 0x1c7   : > { %v561_v35 = vadd.f32 %v943_v34, %v897_v33  ;;  %v552_v36 = vpop.f32.mrb[1].mxu1 }
 0x1c8   : > { %v553_v37 = vadd.f32 %v897_v33, %v552_v36  ;;  %v944_v38 = vpop.f32.mrb[2].mxu1 }
 0x1c9   : > { %v573_v39 = vmul.f32 0.2, %v561_v35  ;;  %v564_v40 = vadd.f32 %v944_v38, %v897_v33  ;;  %v555_v41 = vpop.f32.mrb[3].mxu1  ;;  %vm569_vm6 = vcmp.ge.f32.partialorder %v561_v35, 0.0 }
 0x1ca   : > { %v571_v42 = vmul.f32 0.2, %v553_v37  ;;  %v556_v43 = vadd.f32 %v897_v33, %v555_v41  ;;  %vm567_vm7 = vcmp.ge.f32.partialorder %v553_v37, 0.0 }
 0x1cb   : > { %vm570_vm8 = vcmp.ge.f32.partialorder %v564_v40, 0.0  ;;  %v574_v44 = vmul.f32 0.2, %v564_v40  ;;  %v577_v46 = vsel %vm569_vm6, %v561_v35, %v573_v39 }
 0x1cc   : > { %vm568_vm9 = vcmp.ge.f32.partialorder %v556_v43, 0.0  ;;  %v572_v45 = vmul.f32 0.2, %v556_v43  ;;  %v575_v48 = vsel %vm567_vm7, %v553_v37, %v571_v42 }
 0x1cd   : > { %v578_v47 = vsel %vm570_vm8, %v564_v40, %v574_v44  ;;  %v671_v40 = vld [vmem:[%s1126_s23] sm:$0xff]  ;;  %v673_v44 = vld [vmem:[%s1126_s23 + $0x10] sm:$0xff] }
 0x1ce   : > { %v580_v49 = vpack.c.bf16 %v578_v47, %v577_v46  ;;  %v576_v50 = vsel %vm568_vm9, %v556_v43, %v572_v45 }
 0x1cf   : > { %v579_v51 = vpack.c.bf16 %v576_v50, %v575_v48 }
 0x1d1   : > { %949 = vmatprep.mubr.msk.bf16.mxu0 %vm402_vm0, %v579_v51 }
 0x1d2   : > { %950 = vmatmul.mubr.msk.bf16.vlgmr.msra.gmra.mrb[4].mxu0 %vm402_vm0, %v580_v49 }
 0x2a5   : > { %v951_v53 = vpop.f32.mrb[4].mxu0 }
 0x2a6   : > { %v1090_v54 = vadd.f32 %v951_v53, %v904_v52  ;;  %v644_v55 = vpop.f32.mrb[5].mxu0  ;;  %v674_v53 = vld [vmem:[%s1126_s23 + $0x18] sm:$0xff] }
 0x2a7   : > { %v1092_v56 = vadd.f32 %v904_v52, %v644_v55  ;;  %v952_v57 = vpop.f32.mrb[6].mxu0 }
 0x2a8   : > { %v1094_v58 = vadd.f32 %v952_v57, %v904_v52  ;;  %v647_v59 = vpop.f32.mrb[7].mxu0  ;;  %v714_v60 = vmul.f32 %v1090_v54, %v1090_v54  ;;  %v661_v2 = vmul.f32 0.5, %v1090_v54  ;;  %v710_v14 = vadd.f32 1.0, %v1090_v54 }
 0x2a9   : > { %v1098_v61 = vadd.f32 %v904_v52, %v647_v59  ;;  %v712_v62 = vmul.f32 %v1092_v56, %v1092_v56  ;;  %v659_v1 = vmul.f32 0.5, %v1092_v56  ;;  %v708_v11 = vadd.f32 1.0, %v1092_v56 }
 0x2aa   : > { %724 = vrot.lane.b32.xlu1 %v714_v60, %s987_s19  ;;  %v715_v63 = vmul.f32 %v1094_v58, %v1094_v58  ;;  %v667_v5 = vmul.f32 1.442695, %v661_v2  ;;  %v662_v6 = vmul.f32 0.5, %v1094_v58  ;;  %v711_v24 = vadd.f32 1.0, %v1094_v58 }
 0x2ab   : > { %720 = vrot.lane.b32.xlu0 %v712_v62, %s987_s19  ;;  %v713_v0 = vmul.f32 %v1098_v61, %v1098_v61  ;;  %v663_v3 = vmul.f32 1.442695, %v659_v1  ;;  %v660_v4 = vmul.f32 0.5, %v1098_v61  ;;  %v709_v20 = vadd.f32 1.0, %v1098_v61 }
 0x2ac   : > { %v669_v8 = vmul.f32 1.442695, %v662_v6 }
 0x2ad   : > { %971 = vpow2.f32 %v663_v3  ;;  %v665_v7 = vmul.f32 1.442695, %v660_v4 }
 0x2ae   : > { %726 = vrot.lane.b32.xlu1 %v715_v63, %s987_s19  ;;  %973 = vpow2.f32 %v667_v5  ;;  %v672_v63 = vld [vmem:[%s1126_s23 + $0x8] sm:$0xff] }
 0x2af   : > { %722 = vrot.lane.b32.xlu0 %v713_v0, %s987_s19  ;;  %975 = vpow2.f32 %v665_v7 }
 0x2b0   : > { %977 = vpow2.f32 %v669_v8 }
 0x2b7   : > { %v972_v9 = vpop.eup %971 }
 0x2b8   : > { %v974_v13 = vpop.eup %973  ;;  %v704_v15 = vmul.f32 %v972_v9, %v972_v9 }
 0x2b9   : > { %v976_v17 = vpop.eup %975  ;;  %v706_v23 = vmul.f32 %v974_v13, %v974_v13 }
 0x2ba   : > { %v705_v25 = vmul.f32 %v976_v17, %v976_v17  ;;  %v978_v27 = vpop.eup %977 }
 0x2bb   : > { %v707_v31 = vmul.f32 %v978_v27, %v978_v27 }
 0x31c   : > { %v725_v10 = vpop.permute.xlu1 %724 }
 0x31d   : > { %v721_v12 = vpop.permute.xlu0 %720  ;;  %v734_v18 = vsub.f32 %v710_v14, %v725_v10 }
 0x31e   : > { %v732_v16 = vsub.f32 %v708_v11, %v721_v12 }
 0x31f   : > { %v738_v28 = vsub.f32 %v734_v18, %v706_v23 }
 0x320   : > { %v736_v19 = vsub.f32 %v732_v16, %v704_v15  ;;  %v727_v21 = vpop.permute.xlu1 %726 }
 0x321   : > { %v723_v22 = vpop.permute.xlu0 %722  ;;  %v735_v29 = vsub.f32 %v711_v24, %v727_v21 }
 0x322   : > { %v733_v26 = vsub.f32 %v709_v20, %v723_v22  ;;  %744 = vrot.lane.b32.xlu0 %v736_v19, %s988_s20 }
 0x323   : > { %v739_v32 = vsub.f32 %v735_v29, %v707_v31 }
 0x324   : > { %v737_v30 = vsub.f32 %v733_v26, %v705_v25 }
 0x326   : > { %746 = vrot.lane.b32.xlu1 %v737_v30, %s988_s20  ;;  %748 = vrot.lane.b32.xlu0 %v738_v28, %s988_s20 }
 0x32a   : > { %750 = vrot.lane.b32.xlu1 %v739_v32, %s988_s20 }
 0x32e   : > { %679 = vrot.lane.b32.xlu1 %v972_v9, %s988_s20 }
 0x332   : > { %683 = vrot.lane.b32.xlu1 %v974_v13, %s988_s20 }
 0x394   : > { %v745_v33 = vpop.permute.xlu0 %744 }
 0x395   : > { %v756_v39 = vsel %vm699_vm10, %v745_v33, 0.0 }
 0x398   : > { %v747_v34 = vpop.permute.xlu1 %746  ;;  %v749_v35 = vpop.permute.xlu0 %748 }
 0x399   : > { %v759_v36 = vsel %vm699_vm10, %v747_v34, 0.0  ;;  %v762_v37 = vsel %vm699_vm10, %v749_v35, 0.0 }
 0x39a   : > { %760 = vadd.xlane.f32.xlu1 %v759_v36  ;;  %763 = vadd.xlane.f32.xlu0 %v762_v37 }
 0x39c   : > { %v751_v38 = vpop.permute.xlu1 %750 }
 0x39d   : > { %v765_v43 = vsel %vm699_vm10, %v751_v38, 0.0 }
 0x39e   : > { %757 = vadd.xlane.f32.xlu0 %v756_v39 }
 0x3a0   : > { %v680_v41 = vpop.permute.xlu1 %679 }
 0x3a1   : > { %v691_v42 = vmul.f32 %v680_v41, %v671_v40 }
 0x3a2   : > { %766 = vadd.xlane.f32.xlu0 %v765_v43 }
 0x3a3   : > { %v695_v45 = vadd.f32 %v691_v42, %v1092_v56 }
 0x3a4   : > { %v684_v46 = vpop.permute.xlu1 %683 }
 0x3a5   : > { %700 = vst.msk [vmem:[%s1135_s26] sm:$0xff] %vm699_vm10, %v695_v45  ;;  %v693_v47 = vmul.f32 %v684_v46, %v673_v44 }
 0x3a7   : > { %v697_v48 = vadd.f32 %v693_v47, %v1090_v54 }
 0x3a9   : > { %702 = vst.msk [vmem:[%s1135_s26 + $0x10] sm:$0xff] %vm699_vm10, %v697_v48 }
 0x3ab   : > { %685 = vrot.lane.b32.xlu1 %v978_v27, %s988_s20 }
 0x3b8   : > { %681 = vrot.lane.b32.xlu0 %v976_v17, %s988_s20 }
 0x427   : > { %v761_v49 = vpop.xlane.xlu1 %760  ;;  %v764_v50 = vpop.xlane.xlu0 %763 }
 0x428   : > { %v769_v51 = vmul.f32 -0.5, %v761_v49  ;;  %v770_v52 = vmul.f32 -0.5, %v764_v50 }
 0x42a   : > { %774 = vst.msk [vmem:[%s370_s29 + $0x8] sm:$0xff] %vm772_vm11, %v769_v51  ;;  %775 = vst.msk [vmem:[%s370_s29 + $0x10] sm:$0xff] %vm772_vm11, %v770_v52 }
 0x42b   : > { %v686_v54 = vpop.permute.xlu1 %685  ;;  %v758_v55 = vpop.xlane.xlu0 %757 }
 0x42c   : > { %v694_v56 = vmul.f32 %v686_v54, %v674_v53  ;;  %v768_v57 = vmul.f32 -0.5, %v758_v55 }
 0x42e   : > { %v698_v59 = vadd.f32 %v694_v56, %v1094_v58  ;;  %773 = vst.msk [vmem:[%s370_s29] sm:$0xff] %vm772_vm11, %v768_v57 }
 0x42f   : > { %v767_v60 = vpop.xlane.xlu0 %766 }
 0x430   : > { %703 = vst.msk [vmem:[%s1135_s26 + $0x18] sm:$0xff] %vm699_vm10, %v698_v59  ;;  %v771_v62 = vmul.f32 -0.5, %v767_v60 }
 0x432   : > { %776 = vst.msk [vmem:[%s370_s29 + $0x18] sm:$0xff] %vm772_vm11, %v771_v62 }
 0x433   : > { %v682_v0 = vpop.permute.xlu0 %681 }
 0x434   : > { %v692_v1 = vmul.f32 %v682_v0, %v672_v63 }
 0x436   : > { %v696_v2 = vadd.f32 %v692_v1, %v1098_v61 }
 0x438   : > { %701 = vst.msk [vmem:[%s1135_s26 + $0x8] sm:$0xff] %vm699_vm10, %v696_v2 }
 0x439 PF: > { %s20_s30 = sadd.s32 1, %s985_s30  }
 0x43a   : > { %p17_p4 = scmp.ge.s32.totalorder %s20_s30, 6  }
 0x43c   :  { %19 = sbr.rel (!%p17_p4) target bundleno = 1 (0x1), region = 97 }

</bundles_post_ra>
